<compile_context>
chip_gen: v7x
topology: tpu7x:2x2x1
jax: 0.10.0
libtpu: 0.0.40
codegen_flags: <defaults>
</compile_context>

<pallas_src>
import numpy as np
import jax
import jax.numpy as jnp
from jax.experimental import pallas as pl
from jax.experimental.pallas import tpu as pltpu

_LANE = 128


def _round_up(x: int, m: int) -> int:
    return ((x + m - 1) // m) * m


def _is_multi_tensorcore_device() -> bool:
    """Best-effort: v7x exposes 2 TensorCores per chip; v5e/v6e are single-TC."""
    try:
        kind = jax.devices()[0].device_kind.lower()
    except Exception:
        return False
    return "v7" in kind


def spd_cholesky_ref(l, *, qdim=3, bias=1e-7):
    """Pure-JAX reference / small-batch path: SPD = L @ L^T + bias*I, batched over rows of l."""
    B = l.shape[0]
    L = jnp.zeros((B, qdim, qdim), l.dtype)
    L = L.at[:, jnp.arange(qdim), jnp.arange(qdim)].set(l[:, :qdim])
    if qdim > 1:
        ii, jj = np.tril_indices(qdim, k=-1)  # row-major, matches utils.bfill_lowertriangle
        L = L.at[:, ii, jj].set(l[:, qdim:])
    spsd = jnp.einsum("bik,bjk->bij", L, L)
    return spsd + bias * jnp.eye(qdim, dtype=l.dtype)


def _make_spd3_kernel(bias: float):
    """Kernel over one lane tile: l (6, T) -> flat SPD rows (9, T), batch on the lane axis.

    With L = [[l0, 0, 0], [l3, l1, 0], [l4, l5, l2]]:
        S = L L^T  has unique entries
        s00 = l0^2            s01 = l0*l3           s02 = l0*l4
        s11 = l1^2 + l3^2     s12 = l1*l5 + l3*l4   s22 = l2^2 + l4^2 + l5^2
    Diagonal bias is folded in here; output rows are the row-major flattening of S.
    Pure VPU work — a K=6 matmul would use <1% of the MXU and only add push/pop latency.
    """
    bias = float(bias)

    def kernel(l_ref, o_ref):
        l = l_ref[...].astype(jnp.float32)                      # (6, T), T lanes
        l0, l1, l2, l3, l4, l5 = (l[i:i + 1, :] for i in range(6))
        s00 = l0 * l0 + bias
        s01 = l0 * l3
        s02 = l0 * l4
        s11 = l1 * l1 + l3 * l3 + bias
        s12 = l1 * l5 + l3 * l4
        s22 = l2 * l2 + l4 * l4 + l5 * l5 + bias
        out = jnp.concatenate(
            [s00, s01, s02,
             s01, s11, s12,
             s02, s12, s22], axis=0)                            # (9, T), lane-dense
        o_ref[...] = out.astype(o_ref.dtype)

    return kernel


def spd_cholesky_batched(l, *, qdim=3, bias=1e-7, block_b=8192, min_pallas_batch=1024):
    """Batched forward: l (B, 6) -> SPD (B, 3, 3) = L L^T + bias*I."""
    B, n_l = l.shape
    assert n_l == qdim + qdim * (qdim - 1) // 2, "bad l width for qdim"

    if qdim != 3 or B < min_pallas_batch:
        # Tiny batches (and the generic-qdim case): let XLA fuse it — far cheaper than a launch.
        return spd_cholesky_ref(l, qdim=qdim, bias=bias)

    orig_dtype = l.dtype
    P = qdim * qdim

    # Tile selection: lane axis granularity is 128 regardless of dtype.
    block_b = max(_LANE, _round_up(int(block_b), _LANE))
    if _is_multi_tensorcore_device():
        # Dual-TC (v7x): keep >= 2 parallel grid steps so both TensorCores get work.
        tile = min(block_b, _round_up(pl.cdiv(B, 2), _LANE))
    else:
        # Single-TC (v5e/v6e): largest single tile -> fewest ~0.35us grid-step overheads.
        tile = min(block_b, _round_up(B, _LANE))
    B_pad = _round_up(B, tile)
    grid = (B_pad // tile,)

    # Batch on the lane axis; upcast to f32 for precision + layout simplicity.
    l_t = jnp.pad(l.astype(jnp.float32).T, ((0, 0), (0, B_pad - B)))     # (6, B_pad)

    cost = pl.CostEstimate(
        flops=int(17 * B_pad),                       # 10 muls + 7 adds per element
        transcendentals=0,
        bytes_accessed=int(4 * (n_l + P) * B_pad),   # f32 in + out
    )

    out_t = pl.pallas_call(
        _make_spd3_kernel(bias),
        out_shape=jax.ShapeDtypeStruct((P, B_pad), jnp.float32),
        grid=grid,
        in_specs=[pl.BlockSpec((n_l, tile), lambda i: (0, i))],          # (6, tile) lane tile
        out_specs=pl.BlockSpec((P, tile), lambda i: (0, i)),             # (9, tile) lane-dense
        compiler_params=pltpu.CompilerParams(dimension_semantics=("parallel",)),
        cost_estimate=cost,
    )(l_t)

    out = out_t[:, :B].T.reshape(B, qdim, qdim)
    return out.astype(orig_dtype)


def symm_pos_def_3d_inertia_forward(l_param, *, bias=1e-7):
    """forward() of SymmPosDef3DInertiaMatrixNet: (6,) parameter -> (3,3) SPD inertia matrix.

    B == 1: the fused pure-JAX path is the fast path (no Pallas launch in the robot-model graph).
    """
    return spd_cholesky_ref(l_param[None, :], qdim=3, bias=bias)[0]


if __name__ == "__main__":
    key = jax.random.PRNGKey(0)
    k_param, k_batch, k_small = jax.random.split(key, 3)

    # Module's parameter init: normal(mean=0, std=0.01), shape (6,).
    # TODO(synk): __init__-time np.linalg.cholesky of a provided init_param is host-side
    # parameter initialization, not part of the forward pass; not implemented here.
    l_param = 0.01 * jax.random.normal(k_param, (6,), dtype=jnp.float32)

    spd = jax.block_until_ready(symm_pos_def_3d_inertia_forward(l_param))
    spd_ref = spd_cholesky_ref(l_param[None, :], qdim=3, bias=1e-7)[0]
    assert spd.shape == (3, 3)
    np.testing.assert_allclose(np.asarray(spd), np.asarray(spd_ref), rtol=1e-5, atol=1e-9)
    np.testing.assert_allclose(np.asarray(spd), np.asarray(spd).T, rtol=0.0, atol=1e-9)
    assert np.all(np.linalg.eigvalsh(np.asarray(spd, dtype=np.float64)) > 0.0)

    # Pallas path: batch >= min_pallas_batch, ragged (padded to the 128-lane tile).
    l_batch = jax.random.normal(k_batch, (2000, 6), dtype=jnp.float32)
    out_b = jax.block_until_ready(spd_cholesky_batched(l_batch, qdim=3, bias=1e-7))
    ref_b = spd_cholesky_ref(l_batch, qdim=3, bias=1e-7)
    assert out_b.shape == (2000, 3, 3)
    np.testing.assert_allclose(np.asarray(out_b), np.asarray(ref_b), rtol=1e-5, atol=1e-6)

    # Also force the Pallas path at a small ragged batch (exercises padding + tiny grid).
    l_small = jax.random.normal(k_small, (200, 6), dtype=jnp.float32)
    out_s = jax.block_until_ready(
        spd_cholesky_batched(l_small, qdim=3, bias=1e-7, min_pallas_batch=0))
    ref_s = spd_cholesky_ref(l_small, qdim=3, bias=1e-7)
    assert out_s.shape == (200, 3, 3)
    np.testing.assert_allclose(np.asarray(out_s), np.asarray(ref_s), rtol=1e-5, atol=1e-6)

    print("KERNEL_OK")
</pallas_src>

<mosaic_0001>
module attributes {stable_mosaic.version = 11 : i64} {
  func.func @kernel(%arg0: i32, %arg1: memref<6x2048xf32, #tpu.memory_space<vmem>>, %arg2: memref<9x2048xf32, #tpu.memory_space<vmem>>) attributes {dimension_semantics = [#tpu.dimension_semantics<parallel>], iteration_bounds = array<i64: 1>, scalar_prefetch = 0 : i64, scratch_operands = 0 : i64, tpu.core_type = #tpu.core_type<tc>, window_params = [{transform_indices = @transform_0, window_bounds = array<i64: 6, 2048>}, {transform_indices = @transform_1, window_bounds = array<i64: 9, 2048>}]} {
    %c0 = arith.constant 0 : index
    %c0_0 = arith.constant 0 : index
    %0 = vector.load %arg1[%c0, %c0_0] : memref<6x2048xf32, #tpu.memory_space<vmem>>, vector<6x2048xf32>
    %1 = vector.extract_strided_slice %0 {offsets = [0, 0], sizes = [1, 2048], strides = [1, 1]} : vector<6x2048xf32> to vector<1x2048xf32>
    %2 = vector.extract_strided_slice %0 {offsets = [1, 0], sizes = [1, 2048], strides = [1, 1]} : vector<6x2048xf32> to vector<1x2048xf32>
    %3 = vector.extract_strided_slice %0 {offsets = [2, 0], sizes = [1, 2048], strides = [1, 1]} : vector<6x2048xf32> to vector<1x2048xf32>
    %4 = vector.extract_strided_slice %0 {offsets = [3, 0], sizes = [1, 2048], strides = [1, 1]} : vector<6x2048xf32> to vector<1x2048xf32>
    %5 = vector.extract_strided_slice %0 {offsets = [4, 0], sizes = [1, 2048], strides = [1, 1]} : vector<6x2048xf32> to vector<1x2048xf32>
    %6 = vector.extract_strided_slice %0 {offsets = [5, 0], sizes = [1, 2048], strides = [1, 1]} : vector<6x2048xf32> to vector<1x2048xf32>
    %7 = arith.mulf %1, %1 : vector<1x2048xf32>
    %cst = arith.constant 1.000000e-07 : f32
    %8 = vector.broadcast %cst : f32 to vector<1x2048xf32>
    %9 = arith.addf %7, %8 : vector<1x2048xf32>
    %10 = arith.mulf %1, %4 : vector<1x2048xf32>
    %11 = arith.mulf %1, %5 : vector<1x2048xf32>
    %12 = arith.mulf %2, %2 : vector<1x2048xf32>
    %13 = arith.mulf %4, %4 : vector<1x2048xf32>
    %14 = arith.addf %12, %13 : vector<1x2048xf32>
    %cst_1 = arith.constant 1.000000e-07 : f32
    %15 = vector.broadcast %cst_1 : f32 to vector<1x2048xf32>
    %16 = arith.addf %14, %15 : vector<1x2048xf32>
    %17 = arith.mulf %2, %6 : vector<1x2048xf32>
    %18 = arith.mulf %4, %5 : vector<1x2048xf32>
    %19 = arith.addf %17, %18 : vector<1x2048xf32>
    %20 = arith.mulf %3, %3 : vector<1x2048xf32>
    %21 = arith.mulf %5, %5 : vector<1x2048xf32>
    %22 = arith.addf %20, %21 : vector<1x2048xf32>
    %23 = arith.mulf %6, %6 : vector<1x2048xf32>
    %24 = arith.addf %22, %23 : vector<1x2048xf32>
    %cst_2 = arith.constant 1.000000e-07 : f32
    %25 = vector.broadcast %cst_2 : f32 to vector<1x2048xf32>
    %26 = arith.addf %24, %25 : vector<1x2048xf32>
    %27 = tpu.concatenate %9, %10, %11, %10, %16, %19, %11, %19, %26 in 0 : vector<1x2048xf32>, vector<1x2048xf32>, vector<1x2048xf32>, vector<1x2048xf32>, vector<1x2048xf32>, vector<1x2048xf32>, vector<1x2048xf32>, vector<1x2048xf32>, vector<1x2048xf32> -> vector<9x2048xf32>
    %c0_3 = arith.constant 0 : index
    %c0_4 = arith.constant 0 : index
    %28 = vector.load %arg2[%c0_3, %c0_4] : memref<9x2048xf32, #tpu.memory_space<vmem>>, vector<9x2048xf32>
    tpu.vector_store %arg2[%c0_3, %c0_4], %27 {strides = array<i32>} : memref<9x2048xf32, #tpu.memory_space<vmem>>, vector<9x2048xf32>,
    return
  }
  func.func @transform_0(%arg0: i32) -> (i32, i32) {
    %c0_i32 = arith.constant 0 : i32
    %c0_i32_0 = arith.constant 0 : i32
    return %c0_i32, %arg0 : i32, i32
  }
  func.func @transform_1(%arg0: i32) -> (i32, i32) {
    %c0_i32 = arith.constant 0 : i32
    %c0_i32_0 = arith.constant 0 : i32
    return %c0_i32, %arg0 : i32, i32
  }
}

</mosaic_0001>

<bundles_post_ra>
// kernel: tpu_custom_call.1
= control target key start
LH: loop header
LB: loop body
LE: loop exit
PB: predicated region body
PF: predicated region fallthrough
CT: control target
= control target key end

     0   :  { %6 = vsyncpa [#allocation3], 0  ;;  %s1303_s0 = inlined_call_operand.hbm [shape: f32[6,2048], index: 0, kind: input, shape index: {}]   ;;  %s1304_s1 = inlined_call_operand.hbm [shape: f32[9,2048], index: 1, kind: output, shape index: {}]  }
   0x1   :  { %7 = vsyncpa [#allocation4], 0  ;;  %s993_s6 = smov [#allocation2]   ;;  %s945_s10 = scalar_lea.hbm %s1303_s0, 2048 }
   0x2   :  { %s14_s7 = sshll.u32 %s993_s6, 4  ;;  %p946_p0 = scmp.ne.s32.totalorder %s1303_s0, %s945_s10  ;;  %s15_s7 = int_to_ptr.vmem [resolvable:$true] %s14_s7 }
   0x3   :  { %p949_p1 = scmp.lt.u32.totalorder %s945_s10, %s1303_s0 }
   0x5   :  { %p951_p2 = pnand %p949_p1, %p946_p0 }
   0x7   :  { %954 = shalt.err (!%p951_p2)
}
   0x8   :  { %s955_s15 = scalar_lea.vmem %s15_s7, 2048  ;;  %p960_p4 = scmp.lt.s32.totalorder %s15_s7, %s15_s7 }
   0x9   :  { %p956_p3 = scmp.ne.s32.totalorder %s15_s7, %s955_s15  ;;  %p961_p5 = scmp.lt.s32.totalorder %s955_s15, %s955_s15 }
   0xb   :  { %p962_p6 = por %p961_p5, %p960_p4 }
   0xd   :  { %p963_p7 = pnand %p962_p6, %p956_p3 }
   0xf   :  { %966 = shalt.err (!%p963_p7)
}
  0x10   :  { %17 = dma.hbm_to_vmem [thread:$0]  %s1303_s0, 2048, %s15_s7, [#allocation3]  }
  0x11   :  { %989 = dma.done.wait [#allocation3], 2048  }
  0x12   :  { %990 = vsyncadd [#allocation3], 4294965248  ;;  %vm773_vm0 = vcmask 1040384   ;;  %vm790_vm1 = vcmask 1041408   ;;  %v21_v0 = vld [vmem:[#allocation2] sm:$0x3f] }
  0x13   :  { %vm807_vm2 = vcmask 1042432   ;;  %vm824_vm3 = vcmask 1043456   ;;  %v22_v1 = vld [vmem:[#allocation2 + $0x8] sm:$0x3f]  ;;  %v1019_v2 = vmul.f32 %v21_v0, %v21_v0  ;;  %v85_v3 = vrot.slane %v21_v0, 3  ;;  %s994_s0 = smov [#allocation5]  }
  0x14   :  { %v133_v4 = vrot.slane %v21_v0, 4  ;;  %v261_v5 = vrot.slane %v21_v0, 1  ;;  %vm841_vm4 = vcmask 1044480   ;;  %vm858_vm5 = vcmask 1045504   ;;  %v23_v34 = vld [vmem:[#allocation2 + $0x10] sm:$0x3f] }
  0x15   :  { %v1021_v6 = vmul.f32 %v22_v1, %v22_v1  ;;  %v86_v7 = vrot.slane %v22_v1, 3  ;;  %v134_v8 = vrot.slane %v22_v1, 4  ;;  %v262_v9 = vrot.slane %v22_v1, 1  ;;  %v24_v55 = vld [vmem:[#allocation2 + $0x18] sm:$0x3f]  ;;  %s929_s18 = sshll.u32 %s994_s0, 4  ;;  %s930_s18 = int_to_ptr.vmem [resolvable:$true] %s929_s18 }
  0x16   :  { %v53_v10 = vadd.f32 1e-07, %v1019_v2  ;;  %v117_v11 = vmul.f32 %v85_v3, %v21_v0  ;;  %v165_v12 = vmul.f32 %v133_v4, %v21_v0  ;;  %v197_v13 = vrot.slane %v1019_v2, 2  ;;  %s967_s19 = scalar_lea.vmem %s930_s18, 4096  ;;  %p972_p9 = scmp.lt.s32.totalorder %s930_s18, %s930_s18 }
  0x17   :  { %vm875_vm6 = vcmask 1046528   ;;  %v293_v14 = vmul.f32 %v261_v5, %v21_v0  ;;  %v54_v15 = vadd.f32 1e-07, %v1021_v6  ;;  %v118_v16 = vmul.f32 %v86_v7, %v22_v1  ;;  %p968_p8 = scmp.ne.s32.totalorder %s930_s18, %s967_s19  ;;  %p973_p10 = scmp.lt.s32.totalorder %s967_s19, %s967_s19 }
  0x18   :  { %v166_v17 = vmul.f32 %v134_v8, %v22_v1  ;;  %v1027_v18 = vadd.f32 %v197_v13, %v1019_v2  ;;  %v453_v19 = vrot.slane %v117_v11, 7  ;;  %v501_v20 = vrot.slane %v165_v12, 6 }
  0x19   :  { %v533_v21 = vrot.slane %v117_v11, 5  ;;  %v325_v22 = vrot.slane %v293_v14, 2  ;;  %v661_v23 = vrot.slane %v165_v12, 2  ;;  %v198_v24 = vrot.slane %v1021_v6, 2  ;;  %p974_p11 = por %p973_p10, %p972_p9 }
  0x1a   :  { %v294_v25 = vmul.f32 %v262_v9, %v22_v1  ;;  %v245_v26 = vadd.f32 1e-07, %v1027_v18  ;;  %v774_v27 = vsel %vm773_vm0, %v53_v10, %v453_v19  ;;  %v454_v28 = vrot.slane %v118_v16, 7 }
  0x1b   :  { %v502_v29 = vrot.slane %v166_v17, 6  ;;  %v357_v30 = vadd.f32 %v325_v22, %v165_v12  ;;  %v791_v31 = vsel %vm790_vm1, %v774_v27, %v501_v20  ;;  %v1034_v32 = vadd.f32 %v198_v24, %v1021_v6  ;;  %v25_v27 = vld [vmem:[#allocation2 + $0x20] sm:$0x3f]  ;;  %p975_p12 = pnand %p974_p11, %p968_p8 }
  0x1c   :  { %v326_v33 = vrot.slane %v294_v25, 2  ;;  %v581_v35 = vrot.slane %v245_v26, 5  ;;  %v808_v36 = vsel %vm807_vm2, %v791_v31, %v533_v21  ;;  %v534_v37 = vrot.slane %v118_v16, 5 }
  0x1d   :  { %v662_v38 = vrot.slane %v166_v17, 2  ;;  %v629_v39 = vrot.slane %v357_v30, 4  ;;  %v693_v40 = vrot.slane %v357_v30, 2  ;;  %v246_v41 = vadd.f32 1e-07, %v1034_v32 }
  0x1e   :  { %v358_v42 = vadd.f32 %v326_v33, %v166_v17  ;;  %v825_v43 = vsel %vm824_vm3, %v808_v36, %v581_v35  ;;  %v775_v44 = vsel %vm773_vm0, %v54_v15, %v454_v28  ;;  %v1040_v45 = vmul.f32 %v23_v34, %v23_v34 }
  0x1f   :  { %v87_v46 = vrot.slane %v23_v34, 3  ;;  %v842_v47 = vsel %vm841_vm4, %v825_v43, %v629_v39  ;;  %v582_v48 = vrot.slane %v246_v41, 5  ;;  %v792_v52 = vsel %vm790_vm1, %v775_v44, %v502_v29 }
  0x20   :  { %v630_v49 = vrot.slane %v358_v42, 4  ;;  %v694_v50 = vrot.slane %v358_v42, 2  ;;  %v859_v51 = vsel %vm858_vm5, %v842_v47, %v661_v23  ;;  %v55_v53 = vadd.f32 1e-07, %v1040_v45 }
  0x21   :  { %v119_v54 = vmul.f32 %v87_v46, %v23_v34  ;;  %v876_v56 = vsel %vm875_vm6, %v859_v51, %v693_v40  ;;  %v809_v57 = vsel %vm807_vm2, %v792_v52, %v534_v37  ;;  %v135_v58 = vrot.slane %v23_v34, 4 }
  0x22   :  { %v199_v59 = vrot.slane %v1040_v45, 2  ;;  %892 = vst [vmem:[#allocation5] sm:$0xff] %v876_v56  ;;  %v826_v60 = vsel %vm824_vm3, %v809_v57, %v582_v48  ;;  %v263_v61 = vrot.slane %v23_v34, 1  ;;  %v1054_v4 = vmul.f32 %v24_v55, %v24_v55 }
  0x23   :  { %v455_v62 = vrot.slane %v119_v54, 7  ;;  %v535_v63 = vrot.slane %v119_v54, 5  ;;  %v843_v0 = vsel %vm841_vm4, %v826_v60, %v630_v49  ;;  %v167_v1 = vmul.f32 %v135_v58, %v23_v34  ;;  %v26_v54 = vld [vmem:[#allocation2 + $0x28] sm:$0x3f] }
  0x24   :  { %v1052_v3 = vadd.f32 %v199_v59, %v1040_v45  ;;  %v860_v5 = vsel %vm858_vm5, %v843_v0, %v662_v38  ;;  %v295_v7 = vmul.f32 %v263_v61, %v23_v34  ;;  %v88_v9 = vrot.slane %v24_v55, 3 }
  0x25   :  { %v776_v8 = vsel %vm773_vm0, %v55_v53, %v455_v62  ;;  %v877_v10 = vsel %vm875_vm6, %v860_v5, %v694_v50  ;;  %v503_v12 = vrot.slane %v167_v1, 6  ;;  %v663_v13 = vrot.slane %v167_v1, 2 }
  0x26   :  { %v247_v11 = vadd.f32 1e-07, %v1052_v3  ;;  %893 = vst [vmem:[#allocation5 + $0x8] sm:$0xff] %v877_v10  ;;  %v327_v14 = vrot.slane %v295_v7, 2  ;;  %v56_v15 = vadd.f32 1e-07, %v1054_v4  ;;  %v120_v16 = vmul.f32 %v88_v9, %v24_v55 }
  0x27   :  { %v136_v17 = vrot.slane %v24_v55, 4  ;;  %v793_v20 = vsel %vm790_vm1, %v776_v8, %v503_v12  ;;  %v200_v21 = vrot.slane %v1054_v4, 2  ;;  %v264_v22 = vrot.slane %v24_v55, 1 }
  0x28   :  { %v583_v19 = vrot.slane %v247_v11, 5  ;;  %v359_v23 = vadd.f32 %v327_v14, %v167_v1  ;;  %v810_v24 = vsel %vm807_vm2, %v793_v20, %v535_v63  ;;  %v456_v26 = vrot.slane %v120_v16, 7  ;;  %v27_v11 = vld [vmem:[#allocation2 + $0x30] sm:$0x3f] }
  0x29   :  { %v168_v25 = vmul.f32 %v136_v17, %v24_v55  ;;  %v1066_v29 = vadd.f32 %v200_v21, %v1054_v4  ;;  %v296_v30 = vmul.f32 %v264_v22, %v24_v55  ;;  %v536_v31 = vrot.slane %v120_v16, 5 }
  0x2a   :  { %v827_v28 = vsel %vm824_vm3, %v810_v24, %v583_v19  ;;  %v631_v33 = vrot.slane %v359_v23, 4  ;;  %v695_v34 = vrot.slane %v359_v23, 2  ;;  %v777_v39 = vsel %vm773_vm0, %v56_v15, %v456_v26 }
  0x2b   :  { %v504_v35 = vrot.slane %v168_v25, 6  ;;  %v664_v36 = vrot.slane %v168_v25, 2  ;;  %v248_v37 = vadd.f32 1e-07, %v1066_v29  ;;  %v328_v38 = vrot.slane %v296_v30, 2 }
  0x2c   :  { %v1070_v40 = vmul.f32 %v25_v27, %v25_v27  ;;  %v844_v41 = vsel %vm841_vm4, %v827_v28, %v631_v33  ;;  %v89_v43 = vrot.slane %v25_v27, 3  ;;  %v137_v44 = vrot.slane %v25_v27, 4 }
  0x2d   :  { %v794_v42 = vsel %vm790_vm1, %v777_v39, %v504_v35  ;;  %v861_v46 = vsel %vm858_vm5, %v844_v41, %v663_v13  ;;  %v360_v47 = vadd.f32 %v328_v38, %v168_v25  ;;  %v584_v48 = vrot.slane %v248_v37, 5 }
  0x2e   :  { %v811_v49 = vsel %vm807_vm2, %v794_v42, %v536_v31  ;;  %v878_v50 = vsel %vm875_vm6, %v861_v46, %v695_v34  ;;  %v57_v51 = vadd.f32 1e-07, %v1070_v40  ;;  %v121_v52 = vmul.f32 %v89_v43, %v25_v27 }
  0x2f   :  { %v169_v53 = vmul.f32 %v137_v44, %v25_v27  ;;  %894 = vst [vmem:[#allocation5 + $0x10] sm:$0xff] %v878_v50  ;;  %v632_v55 = vrot.slane %v360_v47, 4  ;;  %v696_v56 = vrot.slane %v360_v47, 2  ;;  %v828_v57 = vsel %vm824_vm3, %v811_v49, %v584_v48 }
  0x30   :  { %v201_v58 = vrot.slane %v1070_v40, 2  ;;  %v265_v59 = vrot.slane %v25_v27, 1  ;;  %v457_v60 = vrot.slane %v121_v52, 7  ;;  %v537_v62 = vrot.slane %v121_v52, 5 }
  0x31   :  { %v505_v61 = vrot.slane %v169_v53, 6  ;;  %v845_v63 = vsel %vm841_vm4, %v828_v57, %v632_v55  ;;  %v665_v1 = vrot.slane %v169_v53, 2  ;;  %v1084_v5 = vmul.f32 %v26_v54, %v26_v54  ;;  %v28_v57 = vld [vmem:[#allocation2 + $0x38] sm:$0x3f] }
  0x32   :  { %v1082_v0 = vadd.f32 %v201_v58, %v1070_v40  ;;  %v862_v7 = vsel %vm858_vm5, %v845_v63, %v664_v36  ;;  %v297_v8 = vmul.f32 %v265_v59, %v25_v27  ;;  %v778_v9 = vsel %vm773_vm0, %v57_v51, %v457_v60 }
  0x33   :  { %v90_v10 = vrot.slane %v26_v54, 3  ;;  %v879_v12 = vsel %vm875_vm6, %v862_v7, %v696_v56  ;;  %v795_v14 = vsel %vm790_vm1, %v778_v9, %v505_v61  ;;  %v58_v15 = vadd.f32 1e-07, %v1084_v5 }
  0x34   :  { %v249_v13 = vadd.f32 1e-07, %v1082_v0  ;;  %895 = vst [vmem:[#allocation5 + $0x18] sm:$0xff] %v879_v12  ;;  %v329_v16 = vrot.slane %v297_v8, 2  ;;  %v812_v17 = vsel %vm807_vm2, %v795_v14, %v537_v62  ;;  %v138_v20 = vrot.slane %v26_v54, 4 }
  0x35   :  { %v122_v19 = vmul.f32 %v90_v10, %v26_v54  ;;  %v202_v22 = vrot.slane %v1084_v5, 2  ;;  %v266_v23 = vrot.slane %v26_v54, 1  ;;  %v1094_v24 = vmul.f32 %v27_v11, %v27_v11 }
  0x36   :  { %v585_v21 = vrot.slane %v249_v13, 5  ;;  %v361_v25 = vadd.f32 %v329_v16, %v169_v53  ;;  %v170_v26 = vmul.f32 %v138_v20, %v26_v54  ;;  %v91_v43 = vrot.slane %v27_v11, 3 }
  0x37   :  { %v458_v27 = vrot.slane %v122_v19, 7  ;;  %v538_v28 = vrot.slane %v122_v19, 5  ;;  %v1098_v31 = vadd.f32 %v202_v22, %v1084_v5  ;;  %v298_v33 = vmul.f32 %v266_v23, %v26_v54 }
  0x38   :  { %v829_v30 = vsel %vm824_vm3, %v812_v17, %v585_v21  ;;  %v59_v34 = vadd.f32 1e-07, %v1094_v24  ;;  %v633_v35 = vrot.slane %v361_v25, 4  ;;  %v697_v36 = vrot.slane %v361_v25, 2  ;;  %v29_v17 = vld [vmem:[#allocation2 + $0x40] sm:$0x3f] }
  0x39   :  { %v506_v37 = vrot.slane %v170_v26, 6  ;;  %v666_v38 = vrot.slane %v170_v26, 2  ;;  %v250_v39 = vadd.f32 1e-07, %v1098_v31  ;;  %v330_v41 = vrot.slane %v298_v33, 2 }
  0x3a   :  { %v779_v42 = vsel %vm773_vm0, %v58_v15, %v458_v27  ;;  %v846_v44 = vsel %vm841_vm4, %v829_v30, %v633_v35  ;;  %v139_v47 = vrot.slane %v27_v11, 4  ;;  %v203_v48 = vrot.slane %v1094_v24, 2 }
  0x3b   :  { %v796_v46 = vsel %vm790_vm1, %v779_v42, %v506_v37  ;;  %v863_v49 = vsel %vm858_vm5, %v846_v44, %v665_v1  ;;  %v362_v50 = vadd.f32 %v330_v41, %v170_v26  ;;  %v586_v51 = vrot.slane %v250_v39, 5 }
  0x3c   :  { %v813_v52 = vsel %vm807_vm2, %v796_v46, %v538_v28  ;;  %v880_v53 = vsel %vm875_vm6, %v863_v49, %v697_v36  ;;  %v123_v54 = vmul.f32 %v91_v43, %v27_v11  ;;  %v171_v55 = vmul.f32 %v139_v47, %v27_v11 }
  0x3d   :  { %v1110_v56 = vadd.f32 %v203_v48, %v1094_v24  ;;  %896 = vst [vmem:[#allocation5 + $0x20] sm:$0xff] %v880_v53  ;;  %v634_v58 = vrot.slane %v362_v50, 4  ;;  %v698_v59 = vrot.slane %v362_v50, 2  ;;  %v830_v60 = vsel %vm824_vm3, %v813_v52, %v586_v51 }
  0x3e   :  { %v267_v61 = vrot.slane %v27_v11, 1  ;;  %v459_v63 = vrot.slane %v123_v54, 7  ;;  %v507_v1 = vrot.slane %v171_v55, 6  ;;  %v539_v7 = vrot.slane %v123_v54, 5 }
  0x3f   :  { %v251_v62 = vadd.f32 1e-07, %v1110_v56  ;;  %v847_v8 = vsel %vm841_vm4, %v830_v60, %v634_v58  ;;  %v667_v10 = vrot.slane %v171_v55, 2  ;;  %v1115_v12 = vmul.f32 %v28_v57, %v28_v57 }
  0x40   :  { %v299_v9 = vmul.f32 %v267_v61, %v27_v11  ;;  %v864_v13 = vsel %vm858_vm5, %v847_v8, %v666_v38  ;;  %v780_v15 = vsel %vm773_vm0, %v59_v34, %v459_v63  ;;  %v92_v16 = vrot.slane %v28_v57, 3 }
  0x41   :  { %v587_v14 = vrot.slane %v251_v62, 5  ;;  %v881_v19 = vsel %vm875_vm6, %v864_v13, %v698_v59  ;;  %v797_v21 = vsel %vm790_vm1, %v780_v15, %v507_v1  ;;  %v60_v22 = vadd.f32 1e-07, %v1115_v12 }
  0x42   :  { %v331_v20 = vrot.slane %v299_v9, 2  ;;  %897 = vst [vmem:[#allocation5 + $0x28] sm:$0xff] %v881_v19  ;;  %v814_v11 = vsel %vm807_vm2, %v797_v21, %v539_v7  ;;  %v124_v23 = vmul.f32 %v92_v16, %v28_v57  ;;  %v140_v25 = vrot.slane %v28_v57, 4  ;;  %v30_v7 = vld [vmem:[#allocation2 + $0x48] sm:$0x3f] }
  0x43   :  { %v204_v26 = vrot.slane %v1115_v12, 2  ;;  %v831_v28 = vsel %vm824_vm3, %v814_v11, %v587_v14  ;;  %v268_v30 = vrot.slane %v28_v57, 1  ;;  %v1125_v33 = vmul.f32 %v29_v17, %v29_v17 }
  0x44   :  { %v363_v27 = vadd.f32 %v331_v20, %v171_v55  ;;  %v172_v34 = vmul.f32 %v140_v25, %v28_v57  ;;  %v460_v36 = vrot.slane %v124_v23, 7  ;;  %v540_v37 = vrot.slane %v124_v23, 5 }
  0x45   :  { %v1128_v35 = vadd.f32 %v204_v26, %v1115_v12  ;;  %v300_v41 = vmul.f32 %v268_v30, %v28_v57  ;;  %v61_v42 = vadd.f32 1e-07, %v1125_v33  ;;  %v93_v50 = vrot.slane %v29_v17, 3 }
  0x46   :  { %v635_v38 = vrot.slane %v363_v27, 4  ;;  %v699_v39 = vrot.slane %v363_v27, 2  ;;  %v508_v44 = vrot.slane %v172_v34, 6  ;;  %v668_v46 = vrot.slane %v172_v34, 2 }
  0x47   :  { %v252_v43 = vadd.f32 1e-07, %v1128_v35  ;;  %v781_v47 = vsel %vm773_vm0, %v60_v22, %v460_v36  ;;  %v332_v49 = vrot.slane %v300_v41, 2  ;;  %v141_v51 = vrot.slane %v29_v17, 4 }
  0x48   :  { %v848_v48 = vsel %vm841_vm4, %v831_v28, %v635_v38  ;;  %v798_v54 = vsel %vm790_vm1, %v781_v47, %v508_v44  ;;  %v205_v55 = vrot.slane %v1125_v33, 2  ;;  %v125_v60 = vmul.f32 %v93_v50, %v29_v17  ;;  %v31_v28 = vld [vmem:[#allocation2 + $0x50] sm:$0x3f] }
  0x49   :  { %v865_v52 = vsel %vm858_vm5, %v848_v48, %v667_v10  ;;  %v588_v53 = vrot.slane %v252_v43, 5  ;;  %v364_v58 = vadd.f32 %v332_v49, %v172_v34  ;;  %v815_v59 = vsel %vm807_vm2, %v798_v54, %v540_v37 }
  0x4a   :  { %v882_v57 = vsel %vm875_vm6, %v865_v52, %v699_v39  ;;  %v173_v62 = vmul.f32 %v141_v51, %v29_v17  ;;  %v1141_v63 = vadd.f32 %v205_v55, %v1125_v33  ;;  %v269_v1 = vrot.slane %v29_v17, 1 }
  0x4b   :  { %898 = vst [vmem:[#allocation5 + $0x30] sm:$0xff] %v882_v57  ;;  %v832_v61 = vsel %vm824_vm3, %v815_v59, %v588_v53  ;;  %v636_v8 = vrot.slane %v364_v58, 4  ;;  %v700_v9 = vrot.slane %v364_v58, 2  ;;  %v461_v10 = vrot.slane %v125_v60, 7 }
  0x4c   :  { %v541_v13 = vrot.slane %v125_v60, 5  ;;  %v253_v14 = vadd.f32 1e-07, %v1141_v63  ;;  %v301_v15 = vmul.f32 %v269_v1, %v29_v17  ;;  %v509_v16 = vrot.slane %v173_v62, 6 }
  0x4d   :  { %v669_v19 = vrot.slane %v173_v62, 2  ;;  %v849_v20 = vsel %vm841_vm4, %v832_v61, %v636_v8  ;;  %v782_v21 = vsel %vm773_vm0, %v61_v42, %v461_v10  ;;  %v1146_v22 = vmul.f32 %v30_v7, %v30_v7 }
  0x4e   :  { %v94_v11 = vrot.slane %v30_v7, 3  ;;  %v866_v23 = vsel %vm858_vm5, %v849_v20, %v668_v46  ;;  %v333_v25 = vrot.slane %v301_v15, 2  ;;  %v589_v26 = vrot.slane %v253_v14, 5  ;;  %v32_v20 = vld [vmem:[#allocation2 + $0x58] sm:$0x3f] }
  0x4f   :  { %v799_v27 = vsel %vm790_vm1, %v782_v21, %v509_v16  ;;  %v883_v30 = vsel %vm875_vm6, %v866_v23, %v700_v9  ;;  %v62_v34 = vadd.f32 1e-07, %v1146_v22  ;;  %v142_v39 = vrot.slane %v30_v7, 4 }
  0x50   :  { %v816_v17 = vsel %vm807_vm2, %v799_v27, %v541_v13  ;;  %v126_v36 = vmul.f32 %v94_v11, %v30_v7  ;;  %899 = vst [vmem:[#allocation5 + $0x38] sm:$0xff] %v883_v30  ;;  %v365_v37 = vadd.f32 %v333_v25, %v173_v62  ;;  %v206_v41 = vrot.slane %v1146_v22, 2 }
  0x51   :  { %v833_v38 = vsel %vm824_vm3, %v816_v17, %v589_v26  ;;  %v270_v42 = vrot.slane %v30_v7, 1  ;;  %v1155_v46 = vmul.f32 %v31_v28, %v31_v28  ;;  %v174_v49 = vmul.f32 %v142_v39, %v30_v7 }
  0x52   :  { %v462_v43 = vrot.slane %v126_v36, 7  ;;  %v542_v44 = vrot.slane %v126_v36, 5  ;;  %v637_v47 = vrot.slane %v365_v37, 4  ;;  %v701_v48 = vrot.slane %v365_v37, 2 }
  0x53   :  { %v1158_v50 = vadd.f32 %v206_v41, %v1146_v22  ;;  %v302_v51 = vmul.f32 %v270_v42, %v30_v7  ;;  %v63_v53 = vadd.f32 1e-07, %v1155_v46  ;;  %v95_v54 = vrot.slane %v31_v28, 3 }
  0x54   :  { %v783_v52 = vsel %vm773_vm0, %v62_v34, %v462_v43  ;;  %v850_v55 = vsel %vm841_vm4, %v833_v38, %v637_v47  ;;  %v510_v58 = vrot.slane %v174_v49, 6  ;;  %v670_v59 = vrot.slane %v174_v49, 2  ;;  %v33_v43 = vld [vmem:[#allocation2 + $0x60] sm:$0x3f] }
  0x55   :  { %v254_v57 = vadd.f32 1e-07, %v1158_v50  ;;  %v867_v60 = vsel %vm858_vm5, %v850_v55, %v669_v19  ;;  %v334_v61 = vrot.slane %v302_v51, 2  ;;  %v127_v62 = vmul.f32 %v95_v54, %v31_v28 }
  0x56   :  { %v143_v1 = vrot.slane %v31_v28, 4  ;;  %v884_v8 = vsel %vm875_vm6, %v867_v60, %v701_v48  ;;  %v800_v7 = vsel %vm790_vm1, %v783_v52, %v510_v58  ;;  %v207_v10 = vrot.slane %v1155_v46, 2 }
  0x57   :  { %v590_v9 = vrot.slane %v254_v57, 5  ;;  %900 = vst [vmem:[#allocation5 + $0x40] sm:$0xff] %v884_v8  ;;  %v366_v13 = vadd.f32 %v334_v61, %v174_v49  ;;  %v817_v14 = vsel %vm807_vm2, %v800_v7, %v542_v44  ;;  %v271_v16 = vrot.slane %v31_v28, 1 }
  0x58   :  { %v175_v15 = vmul.f32 %v143_v1, %v31_v28  ;;  %v1171_v19 = vadd.f32 %v207_v10, %v1155_v46  ;;  %v463_v11 = vrot.slane %v127_v62, 7  ;;  %v543_v23 = vrot.slane %v127_v62, 5 }
  0x59   :  { %v834_v21 = vsel %vm824_vm3, %v817_v14, %v590_v9  ;;  %v638_v25 = vrot.slane %v366_v13, 4  ;;  %v702_v26 = vrot.slane %v366_v13, 2  ;;  %v303_v27 = vmul.f32 %v271_v16, %v31_v28 }
  0x5a   :  { %v511_v30 = vrot.slane %v175_v15, 6  ;;  %v255_v17 = vadd.f32 1e-07, %v1171_v19  ;;  %v671_v34 = vrot.slane %v175_v15, 2  ;;  %v784_v36 = vsel %vm773_vm0, %v63_v53, %v463_v11 }
  0x5b   :  { %v1175_v37 = vmul.f32 %v32_v20, %v32_v20  ;;  %v851_v38 = vsel %vm841_vm4, %v834_v21, %v638_v25  ;;  %v335_v39 = vrot.slane %v303_v27, 2  ;;  %v96_v42 = vrot.slane %v32_v20, 3  ;;  %v34_v25 = vld [vmem:[#allocation2 + $0x68] sm:$0x3f] }
  0x5c   :  { %v801_v41 = vsel %vm790_vm1, %v784_v36, %v511_v30  ;;  %v868_v44 = vsel %vm858_vm5, %v851_v38, %v670_v59  ;;  %v591_v47 = vrot.slane %v255_v17, 5  ;;  %v144_v53 = vrot.slane %v32_v20, 4 }
  0x5d   :  { %v818_v28 = vsel %vm807_vm2, %v801_v41, %v543_v23  ;;  %v64_v48 = vadd.f32 1e-07, %v1175_v37  ;;  %v885_v49 = vsel %vm875_vm6, %v868_v44, %v702_v26  ;;  %v367_v51 = vadd.f32 %v335_v39, %v175_v15 }
  0x5e   :  { %v128_v52 = vmul.f32 %v96_v42, %v32_v20  ;;  %901 = vst [vmem:[#allocation5 + $0x48] sm:$0xff] %v885_v49  ;;  %v835_v54 = vsel %vm824_vm3, %v818_v28, %v591_v47  ;;  %v208_v55 = vrot.slane %v1175_v37, 2  ;;  %v272_v57 = vrot.slane %v32_v20, 1 }
  0x5f   :  { %v1185_v58 = vmul.f32 %v33_v43, %v33_v43  ;;  %v639_v60 = vrot.slane %v367_v51, 4  ;;  %v703_v59 = vrot.slane %v367_v51, 2  ;;  %v176_v61 = vmul.f32 %v144_v53, %v32_v20 }
  0x60   :  { %v464_v62 = vrot.slane %v128_v52, 7  ;;  %v1188_v1 = vadd.f32 %v208_v55, %v1175_v37  ;;  %v304_v8 = vmul.f32 %v272_v57, %v32_v20  ;;  %v544_v9 = vrot.slane %v128_v52, 5 }
  0x61   :  { %v65_v7 = vadd.f32 1e-07, %v1185_v58  ;;  %v852_v10 = vsel %vm841_vm4, %v835_v54, %v639_v60  ;;  %v512_v13 = vrot.slane %v176_v61, 6  ;;  %v672_v14 = vrot.slane %v176_v61, 2 }
  0x62   :  { %v785_v15 = vsel %vm773_vm0, %v64_v48, %v464_v62  ;;  %v869_v16 = vsel %vm858_vm5, %v852_v10, %v671_v34  ;;  %v256_v21 = vadd.f32 1e-07, %v1188_v1  ;;  %v336_v11 = vrot.slane %v304_v8, 2  ;;  %v35_v10 = vld [vmem:[#allocation2 + $0x70] sm:$0x3f] }
  0x63   :  { %v97_v23 = vrot.slane %v33_v43, 3  ;;  %v886_v26 = vsel %vm875_vm6, %v869_v16, %v703_v59  ;;  %v802_v20 = vsel %vm790_vm1, %v785_v15, %v512_v13  ;;  %v145_v27 = vrot.slane %v33_v43, 4 }
  0x64   :  { %v209_v30 = vrot.slane %v1185_v58, 2  ;;  %902 = vst [vmem:[#allocation5 + $0x50] sm:$0xff] %v886_v26  ;;  %v368_v17 = vadd.f32 %v336_v11, %v176_v61  ;;  %v592_v36 = vrot.slane %v256_v21, 5  ;;  %v819_v38 = vsel %vm807_vm2, %v802_v20, %v544_v9 }
  0x65   :  { %v129_v39 = vmul.f32 %v97_v23, %v33_v43  ;;  %v177_v41 = vmul.f32 %v145_v27, %v33_v43  ;;  %v273_v42 = vrot.slane %v33_v43, 1  ;;  %v1202_v44 = vmul.f32 %v34_v25, %v34_v25 }
  0x66   :  { %v1200_v34 = vadd.f32 %v209_v30, %v1185_v58  ;;  %v640_v47 = vrot.slane %v368_v17, 4  ;;  %v704_v28 = vrot.slane %v368_v17, 2  ;;  %v836_v48 = vsel %vm824_vm3, %v819_v38, %v592_v36 }
  0x67   :  { %v465_v49 = vrot.slane %v129_v39, 7  ;;  %v305_v52 = vmul.f32 %v273_v42, %v33_v43  ;;  %v513_v53 = vrot.slane %v177_v41, 6  ;;  %v545_v54 = vrot.slane %v129_v39, 5 }
  0x68   :  { %v257_v51 = vadd.f32 1e-07, %v1200_v34  ;;  %v853_v55 = vsel %vm841_vm4, %v836_v48, %v640_v47  ;;  %v673_v57 = vrot.slane %v177_v41, 2  ;;  %v66_v59 = vadd.f32 1e-07, %v1202_v44 }
  0x69   :  { %v786_v60 = vsel %vm773_vm0, %v65_v7, %v465_v49  ;;  %v870_v61 = vsel %vm858_vm5, %v853_v55, %v672_v14  ;;  %v337_v62 = vrot.slane %v305_v52, 2  ;;  %v98_v15 = vrot.slane %v34_v25, 3 }
  0x6a   :  { %v593_v8 = vrot.slane %v257_v51, 5  ;;  %v803_v9 = vsel %vm790_vm1, %v786_v60, %v513_v53  ;;  %v887_v13 = vsel %vm875_vm6, %v870_v61, %v704_v28  ;;  %v146_v16 = vrot.slane %v34_v25, 4 }
  0x6b   :  { %v820_v43 = vsel %vm807_vm2, %v803_v9, %v545_v54  ;;  %903 = vst [vmem:[#allocation5 + $0x58] sm:$0xff] %v887_v13  ;;  %v369_v21 = vadd.f32 %v337_v62, %v177_v41  ;;  %v210_v7 = vrot.slane %v1202_v44, 2  ;;  %v274_v23 = vrot.slane %v34_v25, 1 }
  0x6c   :  { %v837_v11 = vsel %vm824_vm3, %v820_v43, %v593_v8  ;;  %v130_v26 = vmul.f32 %v98_v15, %v34_v25  ;;  %v178_v14 = vmul.f32 %v146_v16, %v34_v25  ;;  %v1215_v20 = vmul.f32 %v35_v10, %v35_v10  ;;  %v36_v15 = vld [vmem:[#allocation2 + $0x78] sm:$0x3f] }
  0x6d   :  { %v99_v27 = vrot.slane %v35_v10, 3  ;;  %v641_v30 = vrot.slane %v369_v21, 4  ;;  %v705_v17 = vrot.slane %v369_v21, 2  ;;  %v1218_v36 = vadd.f32 %v210_v7, %v1202_v44 }
  0x6e   :  { %v306_v38 = vmul.f32 %v274_v23, %v34_v25  ;;  %v466_v39 = vrot.slane %v130_v26, 7  ;;  %v514_v42 = vrot.slane %v178_v14, 6  ;;  %v546_v47 = vrot.slane %v130_v26, 5 }
  0x6f   :  { %v674_v41 = vrot.slane %v178_v14, 2  ;;  %v854_v28 = vsel %vm841_vm4, %v837_v11, %v641_v30  ;;  %v258_v48 = vadd.f32 1e-07, %v1218_v36  ;;  %v67_v51 = vadd.f32 1e-07, %v1215_v20 }
  0x70   :  { %v338_v49 = vrot.slane %v306_v38, 2  ;;  %v871_v52 = vsel %vm858_vm5, %v854_v28, %v673_v57  ;;  %v787_v53 = vsel %vm773_vm0, %v66_v59, %v466_v39  ;;  %v131_v54 = vmul.f32 %v99_v27, %v35_v10 }
  0x71   :  { %v147_v55 = vrot.slane %v35_v10, 4  ;;  %v888_v60 = vsel %vm875_vm6, %v871_v52, %v705_v17  ;;  %v594_v61 = vrot.slane %v258_v48, 5  ;;  %v804_v62 = vsel %vm790_vm1, %v787_v53, %v514_v42 }
  0x72   :  { %v370_v25 = vadd.f32 %v338_v49, %v178_v14  ;;  %904 = vst [vmem:[#allocation5 + $0x60] sm:$0xff] %v888_v60  ;;  %v821_v8 = vsel %vm807_vm2, %v804_v62, %v546_v47  ;;  %v211_v13 = vrot.slane %v1215_v20, 2  ;;  %v275_v43 = vrot.slane %v35_v10, 1 }
  0x73   :  { %v179_v9 = vmul.f32 %v147_v55, %v35_v10  ;;  %v838_v59 = vsel %vm824_vm3, %v821_v8, %v594_v61  ;;  %v467_v21 = vrot.slane %v131_v54, 7  ;;  %v547_v26 = vrot.slane %v131_v54, 5 }
  0x74   :  { %v642_v16 = vrot.slane %v370_v25, 4  ;;  %v706_v57 = vrot.slane %v370_v25, 2  ;;  %v1231_v11 = vadd.f32 %v211_v13, %v1215_v20  ;;  %v307_v7 = vmul.f32 %v275_v43, %v35_v10 }
  0x75   :  { %v515_v23 = vrot.slane %v179_v9, 6  ;;  %v675_v27 = vrot.slane %v179_v9, 2  ;;  %v788_v30 = vsel %vm773_vm0, %v67_v51, %v467_v21  ;;  %v1235_v17 = vmul.f32 %v36_v15, %v36_v15 }
  0x76   :  { %v855_v14 = vsel %vm841_vm4, %v838_v59, %v642_v16  ;;  %v259_v39 = vadd.f32 1e-07, %v1231_v11  ;;  %v339_v42 = vrot.slane %v307_v7, 2  ;;  %v100_v49 = vrot.slane %v36_v15, 3 }
  0x77   :  { %v872_v38 = vsel %vm858_vm5, %v855_v14, %v674_v41  ;;  %v805_v47 = vsel %vm790_vm1, %v788_v30, %v515_v23  ;;  %v68_v48 = vadd.f32 1e-07, %v1235_v17  ;;  %v148_v51 = vrot.slane %v36_v15, 4 }
  0x78   :  { %v889_v28 = vsel %vm875_vm6, %v872_v38, %v706_v57  ;;  %v822_v10 = vsel %vm807_vm2, %v805_v47, %v547_v26  ;;  %v371_v52 = vadd.f32 %v339_v42, %v179_v9  ;;  %v595_v53 = vrot.slane %v259_v39, 5 }
  0x79   :  { %905 = vst [vmem:[#allocation5 + $0x68] sm:$0xff] %v889_v28  ;;  %v212_v54 = vrot.slane %v1235_v17, 2  ;;  %v132_v55 = vmul.f32 %v100_v49, %v36_v15  ;;  %v276_v41 = vrot.slane %v36_v15, 1  ;;  %v373_v60 = vrot.slane %v1019_v2, 3 }
  0x7a   :  { %v374_v25 = vrot.slane %v1021_v6, 3  ;;  %v643_v61 = vrot.slane %v371_v52, 4  ;;  %v707_v62 = vrot.slane %v371_v52, 2  ;;  %v839_v8 = vsel %vm824_vm3, %v822_v10, %v595_v53 }
  0x7b   :  { %v180_v13 = vmul.f32 %v148_v51, %v36_v15  ;;  %v1248_v43 = vadd.f32 %v212_v54, %v1235_v17  ;;  %v308_v16 = vmul.f32 %v276_v41, %v36_v15  ;;  %v468_v9 = vrot.slane %v132_v55, 7 }
  0x7c   :  { %v548_v57 = vrot.slane %v132_v55, 5  ;;  %v856_v59 = vsel %vm841_vm4, %v839_v8, %v643_v61  ;;  %v405_v23 = vadd.f32 %v373_v60, %v1027_v18  ;;  %v406_v39 = vadd.f32 %v374_v25, %v1034_v32 }
  0x7d   :  { %v516_v21 = vrot.slane %v180_v13, 6  ;;  %v676_v7 = vrot.slane %v180_v13, 2  ;;  %v873_v2 = vsel %vm858_vm5, %v856_v59, %v675_v27  ;;  %v260_v6 = vadd.f32 1e-07, %v1248_v43 }
  0x7e   :  { %v340_v26 = vrot.slane %v308_v16, 2  ;;  %v789_v14 = vsel %vm773_vm0, %v68_v48, %v468_v9  ;;  %v890_v30 = vsel %vm875_vm6, %v873_v2, %v707_v62  ;;  %v421_v15 = vadd.f32 1e-07, %v405_v23 }
  0x7f   :  { %v806_v38 = vsel %vm790_vm1, %v789_v14, %v516_v21  ;;  %906 = vst [vmem:[#allocation5 + $0x70] sm:$0xff] %v890_v30  ;;  %v596_v47 = vrot.slane %v260_v6, 5  ;;  %v375_v18 = vrot.slane %v1040_v45, 3  ;;  %v422_v10 = vadd.f32 1e-07, %v406_v39 }
  0x80   :  { %v372_v42 = vadd.f32 %v340_v26, %v180_v13  ;;  %v823_v28 = vsel %vm807_vm2, %v806_v38, %v548_v57  ;;  %v741_v27 = vrot.slane %v421_v15, 2  ;;  %v376_v49 = vrot.slane %v1054_v4, 3 }
  0x81   :  { %v377_v48 = vrot.slane %v1070_v40, 3  ;;  %v840_v51 = vsel %vm824_vm3, %v823_v28, %v596_v47  ;;  %v407_v54 = vadd.f32 %v375_v18, %v1052_v3  ;;  %v742_v32 = vrot.slane %v422_v10, 2 }
  0x82   :  { %v644_v52 = vrot.slane %v372_v42, 4  ;;  %v708_v53 = vrot.slane %v372_v42, 2  ;;  %908 = vst [vmem:[#allocation5 + $0x80] sm:$0x1] %v741_v27  ;;  %v408_v55 = vadd.f32 %v376_v49, %v1066_v29  ;;  %v378_v45 = vrot.slane %v1084_v5, 3 }
  0x83   :  { %v409_v41 = vadd.f32 %v377_v48, %v1082_v0  ;;  %v423_v25 = vadd.f32 1e-07, %v407_v54  ;;  %v379_v4 = vrot.slane %v1094_v24, 3  ;;  %v380_v40 = vrot.slane %v1115_v12, 3  ;;  %909 = vst [vmem:[#allocation5 + $0x88] sm:$0x1] %v742_v32 }
  0x84   :  { %v857_v60 = vsel %vm841_vm4, %v840_v51, %v644_v52  ;;  %v424_v62 = vadd.f32 1e-07, %v408_v55  ;;  %v410_v8 = vadd.f32 %v378_v45, %v1098_v31  ;;  %v381_v12 = vrot.slane %v1125_v33, 3 }
  0x85   :  { %v874_v61 = vsel %vm858_vm5, %v857_v60, %v676_v7  ;;  %v425_v3 = vadd.f32 1e-07, %v409_v41  ;;  %v743_v13 = vrot.slane %v423_v25, 2  ;;  %v411_v0 = vadd.f32 %v379_v4, %v1110_v56 }
  0x86   :  { %v891_v29 = vsel %vm875_vm6, %v874_v61, %v708_v53  ;;  %v412_v5 = vadd.f32 %v380_v40, %v1128_v35  ;;  %v744_v16 = vrot.slane %v424_v62, 2  ;;  %v426_v24 = vadd.f32 1e-07, %v410_v8 }
  0x87   :  { %907 = vst [vmem:[#allocation5 + $0x78] sm:$0xff] %v891_v29  ;;  %v745_v9 = vrot.slane %v425_v3, 2  ;;  %910 = vst [vmem:[#allocation5 + $0x90] sm:$0x1] %v743_v13  ;;  %v427_v57 = vadd.f32 1e-07, %v411_v0  ;;  %v413_v56 = vadd.f32 %v381_v12, %v1141_v63 }
  0x88   :  { %v428_v59 = vadd.f32 1e-07, %v412_v5  ;;  %v382_v21 = vrot.slane %v1146_v22, 3  ;;  %v383_v31 = vrot.slane %v1155_v46, 3  ;;  %911 = vst [vmem:[#allocation5 + $0x98] sm:$0x1] %v744_v16 }
  0x89   :  { %912 = vst [vmem:[#allocation5 + $0xa0] sm:$0x1] %v745_v9  ;;  %v746_v7 = vrot.slane %v426_v24, 2  ;;  %v384_v35 = vrot.slane %v1175_v37, 3  ;;  %v385_v23 = vrot.slane %v1185_v58, 3  ;;  %v747_v2 = vrot.slane %v427_v57, 2 }
  0x8a   :  { %v748_v6 = vrot.slane %v428_v59, 2  ;;  %v414_v33 = vadd.f32 %v382_v21, %v1158_v50  ;;  %v415_v26 = vadd.f32 %v383_v31, %v1171_v19  ;;  %v429_v14 = vadd.f32 1e-07, %v413_v56 }
  0x8b   :  { %913 = vst [vmem:[#allocation5 + $0xa8] sm:$0x1] %v746_v7  ;;  %v416_v22 = vadd.f32 %v384_v35, %v1188_v1  ;;  %v417_v46 = vadd.f32 %v385_v23, %v1200_v34  ;;  %v386_v30 = vrot.slane %v1202_v44, 3  ;;  %914 = vst [vmem:[#allocation5 + $0xb0] sm:$0x1] %v747_v2  ;;  %v387_v58 = vrot.slane %v1215_v20, 3 }
  0x8c   :  { %915 = vst [vmem:[#allocation5 + $0xb8] sm:$0x1] %v748_v6  ;;  %v430_v63 = vadd.f32 1e-07, %v414_v33  ;;  %v431_v37 = vadd.f32 1e-07, %v415_v26 }
  0x8d   :  { %v388_v38 = vrot.slane %v1235_v17, 3  ;;  %v749_v15 = vrot.slane %v429_v14, 2  ;;  %v432_v50 = vadd.f32 1e-07, %v416_v22  ;;  %v433_v39 = vadd.f32 1e-07, %v417_v46 }
  0x8e   :  { %v418_v19 = vadd.f32 %v386_v30, %v1218_v36  ;;  %v750_v42 = vrot.slane %v430_v63, 2  ;;  %v751_v47 = vrot.slane %v431_v37, 2  ;;  %v419_v1 = vadd.f32 %v387_v58, %v1231_v11 }
  0x8f   :  { %v420_v34 = vadd.f32 %v388_v38, %v1248_v43  ;;  %916 = vst [vmem:[#allocation5 + $0xc0] sm:$0x1] %v749_v15  ;;  %v752_v44 = vrot.slane %v432_v50, 2  ;;  %v753_v28 = vrot.slane %v433_v39, 2 }
  0x90   :  { %v434_v18 = vadd.f32 1e-07, %v418_v19  ;;  %917 = vst [vmem:[#allocation5 + $0xc8] sm:$0x1] %v750_v42  ;;  %918 = vst [vmem:[#allocation5 + $0xd0] sm:$0x1] %v751_v47 }
  0x91   :  { %v435_v20 = vadd.f32 1e-07, %v419_v1  ;;  %v436_v17 = vadd.f32 1e-07, %v420_v34  ;;  %919 = vst [vmem:[#allocation5 + $0xd8] sm:$0x1] %v752_v44 }
  0x92   :  { %920 = vst [vmem:[#allocation5 + $0xe0] sm:$0x1] %v753_v28  ;;  %v754_v27 = vrot.slane %v434_v18, 2 }
  0x93   :  { %v755_v36 = vrot.slane %v435_v20, 2  ;;  %v756_v10 = vrot.slane %v436_v17, 2 }
  0x94   :  { %921 = vst [vmem:[#allocation5 + $0xe8] sm:$0x1] %v754_v27 }
  0x95   :  { %922 = vst [vmem:[#allocation5 + $0xf0] sm:$0x1] %v755_v36  ;;  %923 = vst [vmem:[#allocation5 + $0xf8] sm:$0x1] %v756_v10 }
  0x96   :  { %978 = shalt.err (!%p975_p12)
}
  0x97   :  { %s979_s22 = scalar_lea.hbm %s1304_s1, 4096 }
  0x98   :  { %p980_p13 = scmp.ne.s32.totalorder %s1304_s1, %s979_s22  ;;  %p983_p0 = scmp.lt.u32.totalorder %s979_s22, %s1304_s1 }
  0x9a   :  { %p985_p1 = pnand %p983_p0, %p980_p13 }
  0x9c   :  { %988 = shalt.err (!%p985_p1)
}
  0x9d   :  { %s995_s27 = smov 2048   ;;  %s996_s28 = smov 128  }
  0x9e   :  { %935 = dma.vmem_to_hbm [thread:$0]  %s930_s18, 4096, %s1304_s1, [#allocation4], %s995_s27, %s995_s27, %s996_s28  }
  0x9f   :  { %991 = dma.done.wait [#allocation4], 4096  }
  0xa0   :  { %992 = vsyncadd [#allocation4], 4294963200 }
  0xa1   :  { %939 = vsyncpa [#allocation3], 1 }
  0xa2   :  { %940 = vsyncpa [#allocation4], 1 }

</bundles_post_ra>
